<compile_context>
chip_gen: v7x
topology: tpu7x:2x2x1
jax: 0.10.0
libtpu: 0.0.40
codegen_flags: <defaults>
</compile_context>

<pallas_src>
import functools

import jax
import jax.numpy as jnp
from jax import lax
from jax.experimental import pallas as pl
from jax.experimental.pallas import tpu as pltpu


def _round_up(a, b):
    return (a + b - 1) // b * b


def _round_down(a, b):
    return a // b * b


def _sublane_multiple(dtype):
    # Native packed sublane tile: 8 rows (f32), 16 (bf16/f16), 32 (int8/fp8).
    return max(8, 32 // jnp.dtype(dtype).itemsize)


def _vmem_capacity_bytes():
    try:
        cap = int(pltpu.get_tpu_info().vmem_capacity_bytes)
        if cap > 0:
            return cap
    except Exception:
        pass
    return 64 << 20  # v7x per-core capacity: a safe lower bound everywhere.


def _channel_mask(shifts, gsz, shape, lane_axis):
    """Boolean mask over `shape`: True for channels that belong to a shifted group.

    Uses plain iota + compares (no integer division); for the common case where
    the shifted groups form a channel prefix (e.g. the default [1, 0]) it is a
    single compare per vreg.
    """
    ch = lax.broadcasted_iota(jnp.int32, shape, lane_axis)
    shifted = [g for g, s in enumerate(shifts) if s == 1]
    if shifted == list(range(len(shifted))):  # contiguous prefix (default case)
        return ch < len(shifted) * gsz
    mask = jnp.zeros(shape, jnp.bool_)
    for g in shifted:
        mask = jnp.logical_or(
            mask, jnp.logical_and(ch >= g * gsz, ch < (g + 1) * gsz))
    return mask


def _delayed(x, first_row, axis):
    """out[..., 0, :] = first_row; out[..., j, :] = x[..., j-1, :] for j >= 1."""
    body = lax.slice_in_dim(x, 0, x.shape[axis] - 1, axis=axis)
    return jnp.concatenate([first_row, body], axis=axis)


def _shift1d_packed_kernel(x_ref, o_ref, *, shifts, gsz, lane_aligned):
    """Block = (Bb, L, D): Bb whole sequences; every delayed row 0 is zero."""
    x = x_ref[...]  # (Bb, L, D)
    if lane_aligned:
        # Lane-aligned groups: write each group with a 128-aligned slice store;
        # only the shifted groups pay for the one-row delay.
        for g, s in enumerate(shifts):
            lo, hi = g * gsz, (g + 1) * gsz
            if s == 0:
                o_ref[:, :, lo:hi] = x[:, :, lo:hi]
            else:
                zero_row = jnp.zeros((x.shape[0], 1, gsz), x.dtype)
                o_ref[:, :, lo:hi] = _delayed(x[:, :, lo:hi], zero_row, axis=1)
    else:
        zero_row = jnp.zeros((x.shape[0], 1, x.shape[2]), x.dtype)
        shifted = _delayed(x, zero_row, axis=1)
        cmask = _channel_mask(shifts, gsz, x.shape, x.ndim - 1)
        o_ref[...] = jnp.where(cmask, shifted, x)


def _shift1d_tiled_kernel(x_ref, halo_ref, o_ref, *, shifts, gsz, sub,
                          lane_aligned):
    """Block = (1, tl, D); halo block = the sub rows ending at row i*tl - 1."""
    i = pl.program_id(1)               # sequence-tile index (parallel axis)
    x = x_ref[0]                       # (tl, D)
    # Last row of the previous tile; rows before the sequence start are zero.
    prev = halo_ref[0, sub - 1:sub, :]                      # (1, D)
    prev = prev * (i > 0).astype(prev.dtype)                # zero when i == 0
    if lane_aligned:
        for g, s in enumerate(shifts):
            lo, hi = g * gsz, (g + 1) * gsz
            if s == 0:
                o_ref[0, :, lo:hi] = x[:, lo:hi]
            else:
                o_ref[0, :, lo:hi] = _delayed(x[:, lo:hi], prev[:, lo:hi], axis=0)
    else:
        shifted = _delayed(x, prev, axis=0)
        cmask = _channel_mask(shifts, gsz, x.shape, 1)
        o_ref[0] = jnp.where(cmask, shifted, x)


def shift1d(x, shift_directions=(1, 0), *, max_block_rows=None,
            target_rows=1024):
    """Pallas Shift1d forward.  x: (B, L, D) -> (B, L, D)."""
    B, L, D = x.shape
    shifts = tuple(int(s) for s in shift_directions)
    n = len(shifts)
    assert n >= 1 and D % n == 0, "hidden dim must split evenly across groups"
    assert all(s in (0, 1) for s in shifts), (
        "kernel supports per-group shifts of 0 or 1 (module default [1, 0])")
    # TODO(synk): shifts with |s| > 1 or negative shifts (which also change the
    # output length in the original module) are not implemented.
    # TODO(synk): optional in-place variant (input_output_aliases + BlockSpecs
    # restricted to the shifted channel groups) would halve HBM traffic when
    # the caller can donate x.

    gsz = D // n
    lane_aligned = (gsz % 128 == 0)
    dtype = x.dtype
    itemsize = jnp.dtype(dtype).itemsize
    sub = _sublane_multiple(dtype)

    # ---- generation-aware block sizing (VMEM capacity + dtype sublanes) ----
    vmem_cap = _vmem_capacity_bytes()
    io_budget = (vmem_cap * 3) // 8            # double-buffered in + out tiles
    bytes_per_row = 4 * D * itemsize           # 2 bufs x (in + out) per row
    rows = max(sub, _round_down(io_budget // bytes_per_row, sub))
    rows = min(rows, max(sub, _round_down(target_rows, sub)))
    if max_block_rows is not None:
        rows = max(sub, _round_down(min(rows, int(max_block_rows)), sub))

    if L % sub == 0 and L <= rows:
        # -------- packed path: whole sequences per block, 1-D grid ---------
        bb = max(1, min(B, rows // L))
        grid = (pl.cdiv(B, bb),)
        kernel = functools.partial(_shift1d_packed_kernel, shifts=shifts,
                                   gsz=gsz, lane_aligned=lane_aligned)
        in_specs = [pl.BlockSpec((bb, L, D), lambda i: (i, 0, 0))]
        out_specs = pl.BlockSpec((bb, L, D), lambda i: (i, 0, 0))
        operands = (x,)
        dim_sem = ("parallel",)
        vmem_need = 4 * bb * L * D * itemsize
    else:
        # ------- tiled path: (batch, seq-tile) grid, halo via BlockSpec -----
        tl = min(rows, _round_up(L, sub))
        tl = max(sub, _round_down(tl, sub))
        nsub = tl // sub
        grid = (B, pl.cdiv(L, tl))
        kernel = functools.partial(_shift1d_tiled_kernel, shifts=shifts,
                                   gsz=gsz, sub=sub, lane_aligned=lane_aligned)
        in_specs = [
            pl.BlockSpec((1, tl, D), lambda b, i: (b, i, 0)),
            # sub-row halo block whose last row is row i*tl - 1 of this batch
            # (clamped / unused for i == 0).  Reading it from HBM instead of a
            # VMEM carry removes the serial dependence on the seq axis.
            pl.BlockSpec((1, sub, D),
                         lambda b, i: (b, jnp.maximum(i * nsub - 1, 0), 0)),
        ]
        out_specs = pl.BlockSpec((1, tl, D), lambda b, i: (b, i, 0))
        operands = (x, x)
        dim_sem = ("parallel", "parallel")
        vmem_need = (4 * tl + 2 * sub) * D * itemsize

    # ~2x headroom, capped at physical VMEM, but never below the actual need.
    vmem_limit = int(min(max(2 * vmem_need, 8 << 20), vmem_cap))
    vmem_limit = max(vmem_limit, vmem_need + (1 << 20))
    bytes_accessed = 2 * B * L * D * itemsize

    return pl.pallas_call(
        kernel,
        out_shape=jax.ShapeDtypeStruct((B, L, D), dtype),
        grid_spec=pltpu.PrefetchScalarGridSpec(
            num_scalar_prefetch=0,
            grid=grid,
            in_specs=in_specs,
            out_specs=out_specs,
        ),
        compiler_params=pltpu.CompilerParams(
            dimension_semantics=dim_sem,
            vmem_limit_bytes=vmem_limit,
        ),
        cost_estimate=pl.CostEstimate(
            flops=B * L * D, transcendentals=0, bytes_accessed=bytes_accessed),
    )(*operands)


def shift1d_ref(x, shift_directions=(1, 0)):
    """Pure-JAX reference mirroring the PyTorch module line by line."""
    b, l, d = x.shape
    pad = (min(shift_directions), max(shift_directions))
    xp = jnp.concatenate(
        [jnp.zeros((b, pad[1], d), x.dtype), x,
         jnp.zeros((b, pad[0], d), x.dtype)], axis=1)
    n = len(shift_directions)
    gsz = d // n
    chunks = [xp[:, :, g * gsz:(g + 1) * gsz] for g in range(n)]
    rolled = [jnp.roll(t, s, axis=1) for t, s in zip(chunks, shift_directions)]
    xc = jnp.concatenate(rolled, axis=2)
    return xc[:, pad[1]:l + 1]


if __name__ == "__main__":
    key = jax.random.PRNGKey(0)
    k1, k2, k3 = jax.random.split(key, 3)
    shifts = (1, 0)  # module default

    # 1) Packed path (whole sequences per block), non-lane-aligned groups.
    x1 = jax.random.normal(k1, (2, 16, 128), dtype=jnp.float32)
    out1 = jax.block_until_ready(shift1d(x1, shifts))
    ref1 = shift1d_ref(x1, shifts)
    assert out1.shape == x1.shape, out1.shape
    assert jnp.allclose(out1, ref1, atol=1e-6, rtol=1e-6), "packed path mismatch"

    # 2) Tiled path: halo BlockSpec + ragged last seq tile (L=20, tl=8).
    x2 = jax.random.normal(k2, (2, 20, 128), dtype=jnp.float32)
    out2 = jax.block_until_ready(shift1d(x2, shifts, max_block_rows=8))
    ref2 = shift1d_ref(x2, shifts)
    assert jnp.allclose(out2, ref2, atol=1e-6, rtol=1e-6), "tiled path mismatch"

    # 3) Lane-aligned groups (gsz = 128): packed and forced-tiled variants.
    x3 = jax.random.normal(k3, (2, 16, 256), dtype=jnp.float32)
    ref3 = shift1d_ref(x3, shifts)
    out3 = jax.block_until_ready(shift1d(x3, shifts))
    assert jnp.allclose(out3, ref3, atol=1e-6, rtol=1e-6), (
        "packed lane-aligned mismatch")
    out4 = jax.block_until_ready(shift1d(x3, shifts, max_block_rows=8))
    assert jnp.allclose(out4, ref3, atol=1e-6, rtol=1e-6), (
        "tiled lane-aligned mismatch")

    print("KERNEL_OK")
</pallas_src>

<mosaic_0001>
module attributes {stable_mosaic.version = 11 : i64} {
  func.func @_shift1d_packed_kernel(%arg0: i32, %arg1: memref<2x16x128xf32, #tpu.memory_space<vmem>>, %arg2: memref<2x16x128xf32, #tpu.memory_space<vmem>>) attributes {dimension_semantics = [#tpu.dimension_semantics<parallel>], iteration_bounds = array<i64: 1>, scalar_prefetch = 0 : i64, scratch_operands = 0 : i64, tpu.core_type = #tpu.core_type<tc>, window_params = [{transform_indices = @transform_0, window_bounds = array<i64: 2, 16, 128>}, {transform_indices = @transform_1, window_bounds = array<i64: 2, 16, 128>}]} {
    %c0 = arith.constant 0 : index
    %c0_0 = arith.constant 0 : index
    %c0_1 = arith.constant 0 : index
    %0 = vector.load %arg1[%c0, %c0_0, %c0_1] : memref<2x16x128xf32, #tpu.memory_space<vmem>>, vector<2x16x128xf32>
    %cst = arith.constant 0.000000e+00 : f32
    %1 = vector.broadcast %cst : f32 to vector<2x1x128xf32>
    %2 = vector.extract_strided_slice %0 {offsets = [0, 0, 0], sizes = [2, 15, 128], strides = [1, 1, 1]} : vector<2x16x128xf32> to vector<2x15x128xf32>
    %3 = tpu.concatenate %1, %2 in 1 : vector<2x1x128xf32>, vector<2x15x128xf32> -> vector<2x16x128xf32>
    %4 = tpu.iota {dimensions = array<i32: 2>} : vector<2x16x128xi32>
    %c64_i32 = arith.constant 64 : i32
    %5 = vector.broadcast %c64_i32 : i32 to vector<2x16x128xi32>
    %6 = arith.cmpi slt, %4, %5 : vector<2x16x128xi32>
    %7 = arith.select %6, %3, %0 : vector<2x16x128xi1>, vector<2x16x128xf32>
    %c0_2 = arith.constant 0 : index
    %c0_3 = arith.constant 0 : index
    %c0_4 = arith.constant 0 : index
    %8 = vector.load %arg2[%c0_2, %c0_3, %c0_4] : memref<2x16x128xf32, #tpu.memory_space<vmem>>, vector<2x16x128xf32>
    tpu.vector_store %arg2[%c0_2, %c0_3, %c0_4], %7 {strides = array<i32>} : memref<2x16x128xf32, #tpu.memory_space<vmem>>, vector<2x16x128xf32>,
    return
  }
  func.func @transform_0(%arg0: i32) -> (i32, i32, i32) {
    %c0_i32 = arith.constant 0 : i32
    %c0_i32_0 = arith.constant 0 : i32
    %c0_i32_1 = arith.constant 0 : i32
    return %arg0, %c0_i32, %c0_i32_0 : i32, i32, i32
  }
  func.func @transform_1(%arg0: i32) -> (i32, i32, i32) {
    %c0_i32 = arith.constant 0 : i32
    %c0_i32_0 = arith.constant 0 : i32
    %c0_i32_1 = arith.constant 0 : i32
    return %arg0, %c0_i32, %c0_i32_0 : i32, i32, i32
  }
}

</mosaic_0001>

<bundles_post_ra>
// kernel: tpu_custom_call.1
= control target key start
LH: loop header
LB: loop body
LE: loop exit
PB: predicated region body
PF: predicated region fallthrough
CT: control target
= control target key end

     0   :  { %6 = vsyncpa [#allocation3], 0  ;;  %s176_s0 = inlined_call_operand.hbm [shape: f32[2,16,128], index: 0, kind: input, shape index: {}]   ;;  %s177_s1 = inlined_call_operand.hbm [shape: f32[2,16,128], index: 1, kind: output, shape index: {}]  }
   0x1   :  { %7 = vsyncpa [#allocation4], 0  ;;  %s124_s6 = smov [#allocation2]   ;;  %s76_s10 = scalar_lea.hbm %s176_s0, 512 }
   0x2   :  { %s13_s7 = sshll.u32 %s124_s6, 4  ;;  %p77_p0 = scmp.ne.s32.totalorder %s176_s0, %s76_s10  ;;  %s14_s7 = int_to_ptr.vmem [resolvable:$true] %s13_s7 }
   0x3   :  { %p80_p1 = scmp.lt.u32.totalorder %s76_s10, %s176_s0 }
   0x5   :  { %p82_p2 = pnand %p80_p1, %p77_p0 }
   0x7   :  { %85 = shalt.err (!%p82_p2)
}
   0x8   :  { %s86_s15 = scalar_lea.vmem %s14_s7, 512  ;;  %p91_p4 = scmp.lt.s32.totalorder %s14_s7, %s14_s7 }
   0x9   :  { %p87_p3 = scmp.ne.s32.totalorder %s14_s7, %s86_s15  ;;  %p92_p5 = scmp.lt.s32.totalorder %s86_s15, %s86_s15 }
   0xb   :  { %p93_p6 = por %p92_p5, %p91_p4 }
   0xd   :  { %p94_p7 = pnand %p93_p6, %p87_p3 }
   0xf   :  { %97 = shalt.err (!%p94_p7)
}
  0x10   :  { %s125_s16 = smov 128   ;;  %s126_s17 = smov 8  }
  0x11   :  { %19 = dma.hbm_to_vmem [thread:$0]  %s176_s0, 512, %s14_s7, [#allocation3], %s125_s16, %s125_s16, %s126_s17  }
  0x12   :  { %120 = dma.done.wait [#allocation3], 512  }
  0x13   :  { %121 = vsyncadd [#allocation3], 4294966784  ;;  %v44_v0 = vlaneseq  ;;  %v23_v2 = vld [vmem:[#allocation2] sm:$0xff]  ;;  %vm31_vm0 = vcmask 1040384   ;;  %v24_v3 = vld [vmem:[#allocation2 + $0x8] sm:$0xff]  ;;  %s127_s20 = smov [#allocation5]  }
  0x14   :  { %v25_v4 = vld [vmem:[#allocation2 + $0x10] sm:$0xff]  ;;  %v32_v5 = vrot.slane %v23_v2, 7  ;;  %v33_v6 = vrot.slane %v24_v3, 7  ;;  %v26_v8 = vld [vmem:[#allocation2 + $0x18] sm:$0xff]  ;;  %s60_s21 = sshll.u32 %s127_s20, 4  ;;  %s61_s21 = int_to_ptr.vmem [resolvable:$true] %s60_s21 }
  0x15   :  { %v45_v1 = vand.u32 127, %v44_v0  ;;  %v35_v7 = vrot.slane %v25_v4, 7  ;;  %v36_v9 = vrot.slane %v26_v8, 7  ;;  %s98_s0 = scalar_lea.vmem %s61_s21, 512  ;;  %p103_p9 = scmp.lt.s32.totalorder %s61_s21, %s61_s21 }
  0x16   :  { %v42_v10 = vsel %vm31_vm0, 0.0, %v32_v5  ;;  %v34_v11 = vsel %vm31_vm0, %v32_v5, %v33_v6  ;;  %p99_p8 = scmp.ne.s32.totalorder %s61_s21, %s98_s0  ;;  %p104_p10 = scmp.lt.s32.totalorder %s98_s0, %s98_s0 }
  0x17   :  { %vm46_vm1 = vcmp.lt.s32.totalorder %v45_v1, 64  ;;  %v43_v12 = vsel %vm31_vm0, 0.0, %v35_v7  ;;  %v37_v16 = vsel %vm31_vm0, %v35_v7, %v36_v9 }
  0x18   :  { %v47_v13 = vsel %vm46_vm1, %v42_v10, %v23_v2  ;;  %v48_v14 = vsel %vm46_vm1, %v34_v11, %v24_v3  ;;  %v49_v15 = vsel %vm46_vm1, %v43_v12, %v25_v4  ;;  %v50_v17 = vsel %vm46_vm1, %v37_v16, %v26_v8  ;;  %p105_p11 = por %p104_p10, %p103_p9 }
  0x19   :  { %51 = vst [vmem:[#allocation5] sm:$0xff] %v47_v13  ;;  %52 = vst [vmem:[#allocation5 + $0x8] sm:$0xff] %v48_v14 }
  0x1a   :  { %53 = vst [vmem:[#allocation5 + $0x10] sm:$0xff] %v49_v15  ;;  %54 = vst [vmem:[#allocation5 + $0x18] sm:$0xff] %v50_v17  ;;  %p106_p12 = pnand %p105_p11, %p99_p8 }
  0x1c   :  { %109 = shalt.err (!%p106_p12)
}
  0x1d   :  { %s110_s24 = scalar_lea.hbm %s177_s1, 512 }
  0x1e   :  { %p111_p13 = scmp.ne.s32.totalorder %s177_s1, %s110_s24  ;;  %p114_p0 = scmp.lt.u32.totalorder %s110_s24, %s177_s1 }
  0x20   :  { %p116_p1 = pnand %p114_p0, %p111_p13 }
  0x22   :  { %119 = shalt.err (!%p116_p1)
}
  0x23   :  { %66 = dma.vmem_to_hbm [thread:$0]  %s61_s21, 512, %s177_s1, [#allocation4], %s125_s16, %s125_s16, %s126_s17  }
  0x24   :  { %122 = dma.done.wait [#allocation4], 512  }
  0x25   :  { %123 = vsyncadd [#allocation4], 4294966784 }
  0x26   :  { %70 = vsyncpa [#allocation3], 1 }
  0x27   :  { %71 = vsyncpa [#allocation4], 1 }

</bundles_post_ra>
